<compile_context>
chip_gen: v7x
topology: tpu7x:2x2x1
jax: 0.10.0
libtpu: 0.0.40
codegen_flags: <defaults>
</compile_context>

<pallas_src>
import numpy as np
import jax
import jax.numpy as jnp
from jax.experimental import pallas as pl
from jax.experimental.pallas import tpu as pltpu


# ----------------------------------------------------------------------------
# Deterministic parameter setup (window, real-DFT basis, librosa-style mel fb)
# ----------------------------------------------------------------------------
def _round_up(n: int, m: int) -> int:
    return ((n + m - 1) // m) * m


def hann_window(win_length: int) -> np.ndarray:
    # torch.hann_window(N) default periodic=True: 0.5 - 0.5*cos(2*pi*n/N)
    n = np.arange(win_length, dtype=np.float64)
    return (0.5 - 0.5 * np.cos(2.0 * np.pi * n / win_length)).astype(np.float32)


def real_dft_matrices(fft_size: int, n_freq: int):
    # X[k] = sum_n x[n] * exp(-2*pi*i*k*n/N); only magnitude is needed so the
    # sign of the imaginary part does not matter.
    n = np.arange(fft_size, dtype=np.float64)[:, None]
    k = np.arange(n_freq, dtype=np.float64)[None, :]
    ang = 2.0 * np.pi * n * k / fft_size
    return np.cos(ang).astype(np.float32), np.sin(ang).astype(np.float32)


def _hz_to_mel(f):
    # librosa slaney mel scale (htk=False)
    f = np.asarray(f, dtype=np.float64)
    f_sp = 200.0 / 3.0
    min_log_hz = 1000.0
    min_log_mel = min_log_hz / f_sp
    logstep = np.log(6.4) / 27.0
    mel = f / f_sp
    return np.where(
        f >= min_log_hz,
        min_log_mel + np.log(np.maximum(f, 1e-10) / min_log_hz) / logstep,
        mel,
    )


def _mel_to_hz(m):
    m = np.asarray(m, dtype=np.float64)
    f_sp = 200.0 / 3.0
    min_log_hz = 1000.0
    min_log_mel = min_log_hz / f_sp
    logstep = np.log(6.4) / 27.0
    hz = f_sp * m
    return np.where(m >= min_log_mel, min_log_hz * np.exp(logstep * (m - min_log_mel)), hz)


def librosa_mel(sr, n_fft, n_mels, fmin=0.0, fmax=None) -> np.ndarray:
    # Reimplementation of librosa.filters.mel (htk=False, norm='slaney').
    if fmax is None:
        fmax = sr / 2.0
    n_freq = n_fft // 2 + 1
    fftfreqs = np.linspace(0.0, sr / 2.0, n_freq)
    mel_pts = np.linspace(_hz_to_mel(fmin), _hz_to_mel(fmax), n_mels + 2)
    mel_f = _mel_to_hz(mel_pts)
    fdiff = np.diff(mel_f)
    ramps = mel_f[:, None] - fftfreqs[None, :]
    weights = np.zeros((n_mels, n_freq), dtype=np.float64)
    for i in range(n_mels):
        lower = -ramps[i] / fdiff[i]
        upper = ramps[i + 2] / fdiff[i + 1]
        weights[i] = np.maximum(0.0, np.minimum(lower, upper))
    enorm = 2.0 / (mel_f[2: n_mels + 2] - mel_f[:n_mels])
    weights *= enorm[:, None]
    return weights.astype(np.float32)  # (n_mels, n_freq)


def _build_constants(fft_size, win_length, sample_rate, n_mels, fmin, fmax,
                     compute_dtype):
    """Lane-dense, window-folded constants for the kernel."""
    n_freq_full = fft_size // 2 + 1
    mel = librosa_mel(sample_rate, fft_size, n_mels, fmin, fmax)  # (n_mels, n_freq_full)

    # Drop the Nyquist bin when its mel weight is (numerically) zero — exact
    # for the slaney filterbank with fmax <= sr/2.  Makes n_freq a multiple of
    # 128 (1024 -> 512, 256 -> 128): ~20% fewer MXU passes.  If a future
    # htk/norm change gives the Nyquist bin weight, we keep it (padded).
    nyq_weight = float(np.abs(mel[:, n_freq_full - 1]).max())
    n_freq = fft_size // 2 if nyq_weight < 1e-6 else n_freq_full

    n_freq_pad = _round_up(n_freq, 128)
    n_mels_pad = _round_up(n_mels, 128)

    win = hann_window(win_length)                         # (fft,)
    cos_m, sin_m = real_dft_matrices(fft_size, n_freq)    # (fft, n_freq)

    # Single fused DFT basis with the window baked in: [cos_win | sin_win],
    # each side zero-padded to n_freq_pad lanes.
    basis = np.zeros((fft_size, 2 * n_freq_pad), dtype=np.float32)
    basis[:, :n_freq] = cos_m * win[:, None]
    basis[:, n_freq_pad:n_freq_pad + n_freq] = sin_m * win[:, None]

    # Mel filterbank, transposed and zero-padded: (n_freq_pad, n_mels_pad).
    melmat = np.zeros((n_freq_pad, n_mels_pad), dtype=np.float32)
    melmat[:n_freq, :n_mels] = mel[:, :n_freq].T

    return (jnp.asarray(basis, dtype=compute_dtype),
            jnp.asarray(melmat, dtype=jnp.float32),
            n_freq_pad, n_mels_pad)


# ----------------------------------------------------------------------------
# Pallas kernel: (window-folded) DFT -> magnitude -> mel -> log -> |diff| -> acc
# ----------------------------------------------------------------------------
def _make_kernel(steps, tile, fft_size, rows_valid, rows_total):
    mask_needed = rows_total != rows_valid  # static

    def kernel(fxy_ref, basis_ref, mel_ref, out_ref):
        c = pl.program_id(0)
        i = pl.program_id(1)

        @pl.when(i == 0)
        def _():
            out_ref[...] = jnp.zeros_like(out_ref)

        basis = basis_ref[...]            # (fft, 2*n_freq_pad), Hann folded in
        mel_m = mel_ref[...]              # (n_freq_pad, n_mels_pad)
        n_freq_pad = basis.shape[1] // 2

        # x-frames and y-frames go through ONE MXU pass (weight-stationary RHS).
        frames = fxy_ref[...].reshape(2 * tile, fft_size)
        spec = jnp.dot(frames, basis, preferred_element_type=jnp.float32)
        re = spec[:, :n_freq_pad]
        im = spec[:, n_freq_pad:]
        mag = jnp.sqrt(jnp.maximum(re * re + im * im, 1e-7))
        mel = jnp.dot(mag, mel_m, preferred_element_type=jnp.float32)
        logmel = jnp.log(jnp.maximum(mel, 1e-7))          # (2*tile, n_mels_pad)

        # Sublane-aligned split back into x / y halves, then L1 diff.
        diff = jnp.abs(logmel[:tile] - logmel[tile:])     # (tile, n_mels_pad)

        if mask_needed:
            # Ragged tail rows (>= rows_valid) are duplicated gathers; zero them.
            row0 = (c * steps + i) * tile
            rows = row0 + jax.lax.broadcasted_iota(jnp.int32, (tile, 1), 0)
            diff = jnp.where(rows < rows_valid, diff, 0.0)

        # Reduce rows into a vreg-shaped (8, n_mels_pad) partial sum: pure VPU
        # adds in the hot loop.  Final cross-lane sum happens on the host.
        part = jnp.sum(diff.reshape(tile // 8, 8, diff.shape[1]), axis=0)
        out_ref[...] += part[None, :, :]

    return kernel


def _frame_signals(x, y, fft_size, hop_size, n_frames, rows_out, out_dtype):
    """Reflect-pad (torch.stft center=True) and gather rows_out frames per
    signal, stacked as (2, rows_out, fft).  Rows >= B*n_frames are clamped
    duplicates; the kernel masks their contribution to exactly 0 (no jnp.pad
    of the expanded framed array)."""
    B, T = x.shape
    pad = fft_size // 2
    xyp = jnp.pad(jnp.stack([x, y], axis=0), ((0, 0), (0, 0), (pad, pad)),
                  mode="reflect")                              # (2, B, T + fft)
    M = B * n_frames
    r = jnp.arange(rows_out)
    b = jnp.minimum(r // n_frames, B - 1)
    f = jnp.where(r < M, r % n_frames, 0)
    idx = f[:, None] * hop_size + jnp.arange(fft_size)[None, :]    # (rows_out, fft)
    s = jnp.arange(2)[:, None, None]
    frames = xyp[s, b[None, :, None], idx[None, :, :]]             # (2, rows_out, fft)
    return frames.astype(out_dtype)


def mel_spectral_loss(x, y, *, fft_size=1024, hop_size=120, win_length=1024,
                      sample_rate=24000, n_mels=80, fmin=0, fmax=None,
                      tile_rows=512, num_shards=1, core_parallel=False,
                      compute_dtype=jnp.bfloat16,
                      vmem_limit_bytes=48 * 1024 * 1024):
    """x, y: (B, 1, T) float32 waveforms. Returns scalar mel L1 loss.

    On v7x pass num_shards=2, core_parallel=True to engage both TensorCores.
    """
    assert win_length == fft_size, "win_length != fft_size not supported"  # TODO(synk): pad window symmetrically for win_length < fft_size
    assert fft_size % 128 == 0, "fft_size must be a multiple of 128"
    x = jnp.squeeze(x, axis=1).astype(jnp.float32)
    y = jnp.squeeze(y, axis=1).astype(jnp.float32)
    B, T = x.shape

    n_frames = 1 + T // hop_size          # torch.stft, center=True
    M = B * n_frames

    basis, melmat, n_freq_pad, n_mels_pad = _build_constants(
        fft_size, win_length, sample_rate, n_mels, fmin, fmax, compute_dtype)

    # Tile sizing: big tiles for MXU utilization, never larger than the
    # (8-row aligned) per-shard workload.
    rows_per_shard = -(-M // num_shards)
    tile = min(tile_rows, _round_up(rows_per_shard, 8))
    steps = -(-M // (num_shards * tile))
    M_pad = num_shards * steps * tile

    # TODO(synk): framing happens on the host (hop<fft means ~fft/hop x HBM
    # expansion); an in-kernel strided-DMA framing path would cut HBM traffic.
    fxy = _frame_signals(x, y, fft_size, hop_size, n_frames, M_pad, compute_dtype)

    kernel = _make_kernel(steps, tile, fft_size, M, M_pad)

    sem0 = pltpu.CORE_PARALLEL if (core_parallel and num_shards > 1) else "parallel"
    out = pl.pallas_call(
        kernel,
        out_shape=jax.ShapeDtypeStruct((num_shards, 8, n_mels_pad), jnp.float32),
        grid_spec=pltpu.PrefetchScalarGridSpec(
            num_scalar_prefetch=0,
            grid=(num_shards, steps),
            in_specs=[
                pl.BlockSpec((2, tile, fft_size), lambda c, i: (0, c * steps + i, 0)),
                # Grid-invariant operands: whole-array resident in VMEM
                # (single-buffered, fetched once, no per-step DMA).
                pl.BlockSpec(memory_space=pltpu.MemorySpace.VMEM),
                pl.BlockSpec(memory_space=pltpu.MemorySpace.VMEM),
            ],
            out_specs=pl.BlockSpec((1, 8, n_mels_pad), lambda c, i: (c, 0, 0)),
        ),
        compiler_params=pltpu.CompilerParams(
            dimension_semantics=(sem0, "arbitrary"),
            vmem_limit_bytes=vmem_limit_bytes),
    )(fxy, basis, melmat)

    # F.l1_loss(reduction='mean'): mean over B * n_frames * n_mels elements.
    return jnp.sum(out) / (B * n_frames * n_mels)


# ----------------------------------------------------------------------------
# Pure-JAX reference for sanity checking (full 513/129-bin STFT, all f32)
# ----------------------------------------------------------------------------
def mel_spectral_loss_ref(x, y, *, fft_size=1024, hop_size=120, win_length=1024,
                          sample_rate=24000, n_mels=80, fmin=0, fmax=None):
    x = jnp.squeeze(x, axis=1).astype(jnp.float32)
    y = jnp.squeeze(y, axis=1).astype(jnp.float32)
    window = jnp.asarray(hann_window(win_length))
    n_freq = fft_size // 2 + 1
    cos_m, sin_m = real_dft_matrices(fft_size, n_freq)
    melmat = jnp.asarray(librosa_mel(sample_rate, fft_size, n_mels, fmin, fmax).T)

    def frames_of(sig):
        B, T = sig.shape
        pad = fft_size // 2
        sp = jnp.pad(sig, ((0, 0), (pad, pad)), mode="reflect")
        nf = 1 + T // hop_size
        idx = jnp.arange(nf)[:, None] * hop_size + jnp.arange(fft_size)[None, :]
        return sp[:, idx].reshape(B * nf, fft_size)

    def mag(sig):
        fw = frames_of(sig) * window[None, :]
        re = fw @ jnp.asarray(cos_m)
        im = fw @ jnp.asarray(sin_m)
        return jnp.sqrt(jnp.maximum(re * re + im * im, 1e-7))

    xl = jnp.log(jnp.maximum(mag(x) @ melmat, 1e-7))
    yl = jnp.log(jnp.maximum(mag(y) @ melmat, 1e-7))
    return jnp.mean(jnp.abs(xl - yl))


if __name__ == "__main__":
    key = jax.random.PRNGKey(0)
    kx, ky = jax.random.split(key)
    B, T = 2, 960                       # small shapes; fft=256, hop=64 -> 16 frames/signal
    x = jax.random.normal(kx, (B, 1, T), dtype=jnp.float32)
    y = jax.random.normal(ky, (B, 1, T), dtype=jnp.float32)

    cfg = dict(fft_size=256, hop_size=64, win_length=256)

    # 1) f32 compute path vs pure-JAX reference (tight tolerance)
    ref = jax.block_until_ready(mel_spectral_loss_ref(x, y, **cfg))
    loss_f32 = jax.block_until_ready(
        mel_spectral_loss(x, y, compute_dtype=jnp.float32, **cfg))
    assert jnp.isfinite(loss_f32), "non-finite loss (f32 path)"
    assert abs(float(loss_f32) - float(ref)) < 1e-3 * max(1.0, abs(float(ref))), (loss_f32, ref)

    # 2) ragged-tail masking path (M not a multiple of 8) — f32, tight tolerance
    xt, yt = x[:, :, :920], y[:, :, :920]
    ref_t = jax.block_until_ready(mel_spectral_loss_ref(xt, yt, **cfg))
    loss_t = jax.block_until_ready(
        mel_spectral_loss(xt, yt, compute_dtype=jnp.float32, **cfg))
    assert jnp.isfinite(loss_t), "non-finite loss (tail path)"
    assert abs(float(loss_t) - float(ref_t)) < 1e-3 * max(1.0, abs(float(ref_t))), (loss_t, ref_t)

    # 3) default bf16 fast path (f32 accumulation) — looser tolerance
    loss = jax.block_until_ready(mel_spectral_loss(x, y, **cfg))
    assert jnp.isfinite(loss), "non-finite loss (bf16 path)"
    assert abs(float(loss) - float(ref)) < 2e-2 * max(1.0, abs(float(ref))), (loss, ref)

    print("KERNEL_OK")
</pallas_src>

<mosaic_0001>
module attributes {stable_mosaic.version = 11 : i64} {
  func.func @kernel(%arg0: i32, %arg1: i32, %arg2: memref<2x32x256xf32, #tpu.memory_space<vmem>>, %arg3: memref<256x256xf32, #tpu.memory_space<vmem>>, %arg4: memref<128x128xf32, #tpu.memory_space<vmem>>, %arg5: memref<1x8x128xf32, #tpu.memory_space<vmem>>) attributes {dimension_semantics = [#tpu.dimension_semantics<parallel>, #tpu.dimension_semantics<arbitrary>], iteration_bounds = array<i64: 1, 1>, scalar_prefetch = 0 : i64, scratch_operands = 0 : i64, tpu.core_type = #tpu.core_type<tc>, window_params = [{transform_indices = @transform_0, window_bounds = array<i64: 2, 32, 256>}, {pipeline_mode = #tpu.pipeline_mode<synchronous>, transform_indices = @transform_1, window_bounds = array<i64: 256, 256>}, {pipeline_mode = #tpu.pipeline_mode<synchronous>, transform_indices = @transform_2, window_bounds = array<i64: 128, 128>}, {transform_indices = @transform_3, window_bounds = array<i64: 1, 8, 128>}]} {
    %c0_i32 = arith.constant 0 : i32
    %0 = arith.cmpi eq, %arg1, %c0_i32 : i32
    %1 = arith.extui %0 : i1 to i32
    %c0_i32_0 = arith.constant 0 : i32
    %2 = arith.cmpi ne, %1, %c0_i32_0 : i32
    scf.if %2 {
      %cst_17 = arith.constant 0.000000e+00 : f32
      %30 = vector.broadcast %cst_17 : f32 to vector<1x8x128xf32>
      %c0_18 = arith.constant 0 : index
      %c0_19 = arith.constant 0 : index
      %c0_20 = arith.constant 0 : index
      %31 = vector.load %arg5[%c0_18, %c0_19, %c0_20] : memref<1x8x128xf32, #tpu.memory_space<vmem>>, vector<1x8x128xf32>
      tpu.vector_store %arg5[%c0_18, %c0_19, %c0_20], %30 {strides = array<i32>} : memref<1x8x128xf32, #tpu.memory_space<vmem>>, vector<1x8x128xf32>,
    } else {
    }
    %c0 = arith.constant 0 : index
    %c0_1 = arith.constant 0 : index
    %3 = vector.load %arg3[%c0, %c0_1] : memref<256x256xf32, #tpu.memory_space<vmem>>, vector<256x256xf32>
    %c0_2 = arith.constant 0 : index
    %c0_3 = arith.constant 0 : index
    %4 = vector.load %arg4[%c0_2, %c0_3] : memref<128x128xf32, #tpu.memory_space<vmem>>, vector<128x128xf32>
    %c0_4 = arith.constant 0 : index
    %c0_5 = arith.constant 0 : index
    %c0_6 = arith.constant 0 : index
    %5 = vector.load %arg2[%c0_4, %c0_5, %c0_6] : memref<2x32x256xf32, #tpu.memory_space<vmem>>, vector<2x32x256xf32>
    %6 = vector.shape_cast %5 : vector<2x32x256xf32> to vector<64x256xf32>
    %cst = arith.constant dense<0.000000e+00> : vector<64x256xf32>
    %7 = tpu.matmul %6, %3, %cst {dimension_numbers = #tpu.dot_dimension_numbers<[1], [0], [0], [1], [0, 0, 1, 1], [], []>} : vector<64x256xf32>, vector<256x256xf32>, vector<64x256xf32> -> vector<64x256xf32>
    %8 = vector.extract_strided_slice %7 {offsets = [0, 0], sizes = [64, 128], strides = [1, 1]} : vector<64x256xf32> to vector<64x128xf32>
    %9 = vector.extract_strided_slice %7 {offsets = [0, 128], sizes = [64, 128], strides = [1, 1]} : vector<64x256xf32> to vector<64x128xf32>
    %10 = arith.mulf %8, %8 : vector<64x128xf32>
    %11 = arith.mulf %9, %9 : vector<64x128xf32>
    %12 = arith.addf %10, %11 : vector<64x128xf32>
    %cst_7 = arith.constant 1.000000e-07 : f32
    %13 = vector.broadcast %cst_7 : f32 to vector<64x128xf32>
    %14 = arith.maximumf %12, %13 : vector<64x128xf32>
    %15 = math.sqrt %14 : vector<64x128xf32>
    %cst_8 = arith.constant dense<0.000000e+00> : vector<64x128xf32>
    %16 = tpu.matmul %15, %4, %cst_8 {dimension_numbers = #tpu.dot_dimension_numbers<[1], [0], [0], [1], [0, 0, 1, 1], [], []>} : vector<64x128xf32>, vector<128x128xf32>, vector<64x128xf32> -> vector<64x128xf32>
    %cst_9 = arith.constant 1.000000e-07 : f32
    %17 = vector.broadcast %cst_9 : f32 to vector<64x128xf32>
    %18 = arith.maximumf %16, %17 : vector<64x128xf32>
    %19 = math.log %18 : vector<64x128xf32>
    %20 = vector.extract_strided_slice %19 {offsets = [0, 0], sizes = [32, 128], strides = [1, 1]} : vector<64x128xf32> to vector<32x128xf32>
    %21 = vector.extract_strided_slice %19 {offsets = [32, 0], sizes = [32, 128], strides = [1, 1]} : vector<64x128xf32> to vector<32x128xf32>
    %22 = arith.subf %20, %21 : vector<32x128xf32>
    %23 = math.absf %22 : vector<32x128xf32>
    %24 = vector.shape_cast %23 : vector<32x128xf32> to vector<4x8x128xf32>
    %cst_10 = arith.constant dense<0.000000e+00> : vector<8x128xf32>
    %25 = vector.multi_reduction <add>, %24, %cst_10 [0] : vector<4x8x128xf32> to vector<8x128xf32>
    %c0_11 = arith.constant 0 : index
    %c0_12 = arith.constant 0 : index
    %c0_13 = arith.constant 0 : index
    %26 = vector.load %arg5[%c0_11, %c0_12, %c0_13] : memref<1x8x128xf32, #tpu.memory_space<vmem>>, vector<1x8x128xf32>
    %27 = vector.shape_cast %25 : vector<8x128xf32> to vector<1x8x128xf32>
    %28 = arith.addf %26, %27 : vector<1x8x128xf32>
    %c0_14 = arith.constant 0 : index
    %c0_15 = arith.constant 0 : index
    %c0_16 = arith.constant 0 : index
    %29 = vector.load %arg5[%c0_14, %c0_15, %c0_16] : memref<1x8x128xf32, #tpu.memory_space<vmem>>, vector<1x8x128xf32>
    tpu.vector_store %arg5[%c0_14, %c0_15, %c0_16], %28 {strides = array<i32>} : memref<1x8x128xf32, #tpu.memory_space<vmem>>, vector<1x8x128xf32>,
    return
  }
  func.func @transform_0(%arg0: i32, %arg1: i32) -> (i32, i32, i32) {
    %c1_i32 = arith.constant 1 : i32
    %0 = arith.muli %arg0, %c1_i32 : i32
    %1 = arith.addi %0, %arg1 : i32
    %c0_i32 = arith.constant 0 : i32
    %c0_i32_0 = arith.constant 0 : i32
    %c0_i32_1 = arith.constant 0 : i32
    return %c0_i32, %1, %c0_i32_0 : i32, i32, i32
  }
  func.func @transform_1(%arg0: i32, %arg1: i32) -> (i32, i32) {
    %c0_i32 = arith.constant 0 : i32
    %c0_i32_0 = arith.constant 0 : i32
    %c0_i32_1 = arith.constant 0 : i32
    return %c0_i32, %c0_i32_0 : i32, i32
  }
  func.func @transform_2(%arg0: i32, %arg1: i32) -> (i32, i32) {
    %c0_i32 = arith.constant 0 : i32
    %c0_i32_0 = arith.constant 0 : i32
    %c0_i32_1 = arith.constant 0 : i32
    return %c0_i32, %c0_i32_0 : i32, i32
  }
  func.func @transform_3(%arg0: i32, %arg1: i32) -> (i32, i32, i32) {
    %c0_i32 = arith.constant 0 : i32
    %c0_i32_0 = arith.constant 0 : i32
    %c0_i32_1 = arith.constant 0 : i32
    return %arg0, %c0_i32, %c0_i32_0 : i32, i32, i32
  }
}

</mosaic_0001>

<bundles_post_ra>
// kernel: tpu_custom_call.1
= control target key start
LH: loop header
LB: loop body
LE: loop exit
PB: predicated region body
PF: predicated region fallthrough
CT: control target
= control target key end

     0   :  { %8 = vsyncpa [#allocation3], 0  ;;  %s906_s0 = inlined_call_operand.hbm [shape: f32[2,32,256], index: 0, kind: input, shape index: {}]   ;;  %s907_s1 = inlined_call_operand.hbm [shape: f32[256,256], index: 1, kind: input, shape index: {}]   ;;  %s908_s2 = inlined_call_operand.hbm [shape: f32[128,128], index: 2, kind: input, shape index: {}]   ;;  %s909_s3 = inlined_call_operand.hbm [shape: f32[1,8,128], index: 3, kind: output, shape index: {}]  }
   0x1   :  { %9 = vsyncpa [#allocation6], 0 }
   0x2   :  { %10 = vsyncpa [#allocation4], 0  ;;  %s823_s12 = smov [#allocation5]   ;;  %s824_s14 = smov [#allocation2]  }
   0x3   :  { %s33_s13 = sshll.u32 %s823_s12, 4  ;;  %s21_s15 = sshll.u32 %s824_s14, 4  ;;  %s34_s13 = int_to_ptr.vmem [resolvable:$true] %s33_s13  ;;  %s851_s15 = int_to_ptr.vmem [resolvable:$true] %s21_s15 }
   0x4   :  { %s729_s18 = scalar_lea.hbm %s907_s1, 8192 }
   0x5   :  { %p730_p0 = scmp.ne.s32.totalorder %s907_s1, %s729_s18  ;;  %p733_p1 = scmp.lt.u32.totalorder %s729_s18, %s907_s1 }
   0x7   :  { %p735_p2 = pnand %p733_p1, %p730_p0 }
   0x9   :  { %738 = shalt.err (!%p735_p2)
}
   0xa   :  { %s739_s23 = scalar_lea.vmem %s34_s13, 8192  ;;  %p744_p4 = scmp.lt.s32.totalorder %s34_s13, %s34_s13 }
   0xb   :  { %p740_p3 = scmp.ne.s32.totalorder %s34_s13, %s739_s23  ;;  %p745_p5 = scmp.lt.s32.totalorder %s739_s23, %s739_s23 }
   0xd   :  { %p746_p6 = por %p745_p5, %p744_p4 }
   0xf   :  { %p747_p7 = pnand %p746_p6, %p740_p3 }
  0x11   :  { %750 = shalt.err (!%p747_p7)
}
  0x12   :  { %s825_s24 = smov 256   ;;  %s826_s25 = smov 16  }
  0x13   :  { %39 = dma.hbm_to_vmem [thread:$0]  %s907_s1, 8192, %s34_s13, [#allocation6], %s825_s24, %s825_s24, %s826_s25  }
  0x14   :  { %s751_s30 = scalar_lea.hbm %s906_s0, 2048 }
  0x15   :  { %p752_p8 = scmp.ne.s32.totalorder %s906_s0, %s751_s30  ;;  %p755_p9 = scmp.lt.u32.totalorder %s751_s30, %s906_s0 }
  0x17   :  { %p757_p10 = pnand %p755_p9, %p752_p8 }
  0x19   :  { %760 = shalt.err (!%p757_p10)
}
  0x1a   :  { %s761_s8 = scalar_lea.vmem %s851_s15, 2048  ;;  %p766_p12 = scmp.lt.s32.totalorder %s851_s15, %s851_s15 }
  0x1b   :  { %p762_p11 = scmp.ne.s32.totalorder %s851_s15, %s761_s8  ;;  %p767_p13 = scmp.lt.s32.totalorder %s761_s8, %s761_s8 }
  0x1d   :  { %p768_p0 = por %p767_p13, %p766_p12 }
  0x1f   :  { %p769_p1 = pnand %p768_p0, %p762_p11 }
  0x21   :  { %772 = shalt.err (!%p769_p1)
}
  0x22   :  { %27 = dma.hbm_to_vmem [thread:$0]  %s906_s0, 2048, %s851_s15, [#allocation3], %s825_s24, %s825_s24, %s826_s25  }
  0x23   :  { %s827_s10 = smov [#allocation7]   ;;  %s773_s14 = scalar_lea.hbm %s908_s2, 2048 }
  0x24   :  { %s45_s11 = sshll.u32 %s827_s10, 4  ;;  %p774_p2 = scmp.ne.s32.totalorder %s908_s2, %s773_s14  ;;  %s46_s11 = int_to_ptr.vmem [resolvable:$true] %s45_s11 }
  0x25   :  { %p777_p3 = scmp.lt.u32.totalorder %s773_s14, %s908_s2 }
  0x27   :  { %p779_p4 = pnand %p777_p3, %p774_p2 }
  0x29   :  { %782 = shalt.err (!%p779_p4)
}
  0x2a   :  { %s783_s20 = scalar_lea.vmem %s46_s11, 2048  ;;  %p788_p6 = scmp.lt.s32.totalorder %s46_s11, %s46_s11 }
  0x2b   :  { %p784_p5 = scmp.ne.s32.totalorder %s46_s11, %s783_s20  ;;  %p789_p7 = scmp.lt.s32.totalorder %s783_s20, %s783_s20 }
  0x2d   :  { %p790_p8 = por %p789_p7, %p788_p6 }
  0x2f   :  { %p791_p9 = pnand %p790_p8, %p784_p5 }
  0x31   :  { %794 = shalt.err (!%p791_p9)
}
  0x32   :  { %s828_s0 = smov 128   ;;  %s829_s15 = smov 8  }
  0x33   :  { %51 = dma.hbm_to_vmem [thread:$0]  %s908_s2, 2048, %s46_s11, [#allocation6], %s828_s0, %s828_s0, %s829_s15  }
  0x34   :  { %817 = dma.done.wait [#allocation3], 2048  }
  0x35   :  { %818 = vsyncadd [#allocation3], 4294965248 }
  0x36   :  { %819 = dma.done.wait [#allocation6], 10240  }
  0x37   :  { %820 = vsyncadd [#allocation6], 4294957056  ;;  %v69_v0 = vld [vmem:[#allocation5 + $0x8] sm:$0xff]  ;;  %v71_v1 = vld [vmem:[#allocation5 + $0x18] sm:$0xff]  ;;  %s830_s2 = smov [#allocation8]  }
  0x38   :  { %v68_v2 = vld [vmem:[#allocation5] sm:$0xff]  ;;  %v592_v3 = vpack.c.bf16 %v71_v1, %v69_v0  ;;  %v70_v4 = vld [vmem:[#allocation5 + $0x10] sm:$0xff]  ;;  %v73_v5 = vld [vmem:[#allocation5 + $0x28] sm:$0xff]  ;;  %s514_s23 = sshll.u32 %s830_s2, 4  ;;  %s515_s23 = int_to_ptr.vmem [resolvable:$true] %s514_s23 }
  0x39   :  { %v75_v6 = vld [vmem:[#allocation5 + $0x38] sm:$0xff]  ;;  %v594_v7 = vpack.c.bf16 %v70_v4, %v68_v2  ;;  %v72_v9 = vld [vmem:[#allocation5 + $0x20] sm:$0xff]  ;;  %v74_v10 = vld [vmem:[#allocation5 + $0x30] sm:$0xff]  ;;  %s795_s24 = scalar_lea.vmem %s515_s23, 128  ;;  %p800_p11 = scmp.lt.s32.totalorder %s515_s23, %s515_s23 }
  0x3a   :  { %v596_v8 = vpack.c.bf16 %v75_v6, %v73_v5  ;;  %v77_v11 = vld [vmem:[#allocation5 + $0x48] sm:$0xff]  ;;  %593 = vmatprep.subr.bf16.mxu0 %v592_v3  ;;  %v79_v12 = vld [vmem:[#allocation5 + $0x58] sm:$0xff]  ;;  %v598_v13 = vpack.c.bf16 %v74_v10, %v72_v9  ;;  %v76_v15 = vld [vmem:[#allocation5 + $0x40] sm:$0xff]  ;;  %p796_p10 = scmp.ne.s32.totalorder %s515_s23, %s795_s24  ;;  %p801_p12 = scmp.lt.s32.totalorder %s795_s24, %s795_s24 }
  0x3b   :  { %595 = vmatpush1.bf16.msra.mxu0 %v594_v7  ;;  %v600_v14 = vpack.c.bf16 %v79_v12, %v77_v11  ;;  %v78_v16 = vld [vmem:[#allocation5 + $0x50] sm:$0xff]  ;;  %v81_v17 = vld [vmem:[#allocation5 + $0x68] sm:$0xff]  ;;  %v83_v18 = vld [vmem:[#allocation5 + $0x78] sm:$0xff] }
  0x3c   :  { %597 = vmatprep.subr.bf16.mxu0 %v596_v8  ;;  %v602_v19 = vpack.c.bf16 %v78_v16, %v76_v15  ;;  %v604_v20 = vpack.c.bf16 %v83_v18, %v81_v17  ;;  %v80_v21 = vld [vmem:[#allocation5 + $0x60] sm:$0xff]  ;;  %v82_v22 = vld [vmem:[#allocation5 + $0x70] sm:$0xff]  ;;  %v85_v23 = vld [vmem:[#allocation5 + $0x88] sm:$0xff]  ;;  %p802_p13 = por %p801_p12, %p800_p11 }
  0x3d   :  { %v87_v24 = vld [vmem:[#allocation5 + $0x98] sm:$0xff]  ;;  %v606_v25 = vpack.c.bf16 %v82_v22, %v80_v21  ;;  %v84_v27 = vld [vmem:[#allocation5 + $0x80] sm:$0xff]  ;;  %v86_v28 = vld [vmem:[#allocation5 + $0x90] sm:$0xff] }
  0x3e   :  { %v608_v26 = vpack.c.bf16 %v87_v24, %v85_v23  ;;  %v89_v29 = vld [vmem:[#allocation5 + $0xa8] sm:$0xff]  ;;  %v91_v30 = vld [vmem:[#allocation5 + $0xb8] sm:$0xff]  ;;  %v610_v31 = vpack.c.bf16 %v86_v28, %v84_v27  ;;  %v88_v33 = vld [vmem:[#allocation5 + $0xa0] sm:$0xff]  ;;  %p803_p0 = pnand %p802_p13, %p796_p10 }
  0x3f   :  { %599 = vmatpush1.bf16.msra.mxu0 %v598_v13  ;;  %v612_v32 = vpack.c.bf16 %v91_v30, %v89_v29  ;;  %v90_v34 = vld [vmem:[#allocation5 + $0xb0] sm:$0xff]  ;;  %v93_v35 = vld [vmem:[#allocation5 + $0xc8] sm:$0xff]  ;;  %v95_v36 = vld [vmem:[#allocation5 + $0xd8] sm:$0xff] }
  0x40   :  { %601 = vmatprep.subr.bf16.mxu0 %v600_v14  ;;  %v614_v37 = vpack.c.bf16 %v90_v34, %v88_v33  ;;  %v616_v38 = vpack.c.bf16 %v95_v36, %v93_v35  ;;  %v92_v39 = vld [vmem:[#allocation5 + $0xc0] sm:$0xff]  ;;  %v94_v40 = vld [vmem:[#allocation5 + $0xd0] sm:$0xff]  ;;  %v149_v41 = vld [vmem:[#allocation2 + $0x8] sm:$0xff] }
  0x41   :  { %v97_v42 = vld [vmem:[#allocation5 + $0xe8] sm:$0xff]  ;;  %v99_v43 = vld [vmem:[#allocation5 + $0xf8] sm:$0xff]  ;;  %228 = vmatprep.mubr.f32.mxu0 %v149_v41  ;;  %v618_v44 = vpack.c.bf16 %v94_v40, %v92_v39  ;;  %v96_v46 = vld [vmem:[#allocation5 + $0xe0] sm:$0xff] }
  0x42   :  { %v620_v45 = vpack.c.bf16 %v99_v43, %v97_v42  ;;  %v98_v47 = vld [vmem:[#allocation5 + $0xf0] sm:$0xff]  ;;  %v101_v48 = vld [vmem:[#allocation5 + $0x108] sm:$0xff]  ;;  %v103_v49 = vld [vmem:[#allocation5 + $0x118] sm:$0xff] }
  0x43   :  { %603 = vmatpush1.bf16.msra.mxu0 %v602_v19  ;;  %v132_v50 = vld [vmem:[#allocation7] sm:$0xff]  ;;  %v133_v51 = vld [vmem:[#allocation7 + $0x8] sm:$0xff]  ;;  %v134_v52 = vld [vmem:[#allocation7 + $0x10] sm:$0xff]  ;;  %v622_v54 = vpack.c.bf16 %v98_v47, %v96_v46  ;;  %v624_v57 = vpack.c.bf16 %v103_v49, %v101_v48 }
  0x44   :  { %605 = vmatprep.subr.bf16.mxu0 %v604_v20  ;;  %v135_v53 = vld [vmem:[#allocation7 + $0x18] sm:$0xff]  ;;  %v656_v55 = vpack.c.bf16 %v133_v51, %v132_v50  ;;  %v100_v58 = vld [vmem:[#allocation5 + $0x100] sm:$0xff]  ;;  %v102_v59 = vld [vmem:[#allocation5 + $0x110] sm:$0xff] }
  0x45   :  { %v660_v56 = vpack.c.bf16 %v135_v53, %v134_v52  ;;  %v105_v60 = vld [vmem:[#allocation5 + $0x128] sm:$0xff]  ;;  %v107_v61 = vld [vmem:[#allocation5 + $0x138] sm:$0xff]  ;;  %v626_v62 = vpack.c.bf16 %v102_v59, %v100_v58  ;;  %v104_v0 = vld [vmem:[#allocation5 + $0x120] sm:$0xff] }
  0x46   :  { %657 = vmatprep.subr.bf16.mxu1 %v656_v55  ;;  %v628_v63 = vpack.c.bf16 %v107_v61, %v105_v60  ;;  %v106_v1 = vld [vmem:[#allocation5 + $0x130] sm:$0xff]  ;;  %v109_v2 = vld [vmem:[#allocation5 + $0x148] sm:$0xff]  ;;  %v111_v3 = vld [vmem:[#allocation5 + $0x158] sm:$0xff] }
  0x47   :  { %607 = vmatpush1.bf16.msra.mxu0 %v606_v25  ;;  %659 = vmatpush3.bf16.msra.mxu1 %v656_v55  ;;  %v630_v4 = vpack.c.bf16 %v106_v1, %v104_v0  ;;  %v632_v5 = vpack.c.bf16 %v111_v3, %v109_v2  ;;  %v108_v6 = vld [vmem:[#allocation5 + $0x140] sm:$0xff]  ;;  %v110_v7 = vld [vmem:[#allocation5 + $0x150] sm:$0xff]  ;;  %v113_v8 = vld [vmem:[#allocation5 + $0x168] sm:$0xff] }
  0x48   :  { %609 = vmatprep.subr.bf16.mxu0 %v608_v26  ;;  %661 = vmatprep.subr.bf16.mxu1 %v660_v56  ;;  %v115_v9 = vld [vmem:[#allocation5 + $0x178] sm:$0xff]  ;;  %v634_v10 = vpack.c.bf16 %v110_v7, %v108_v6  ;;  %v112_v12 = vld [vmem:[#allocation5 + $0x160] sm:$0xff]  ;;  %v114_v13 = vld [vmem:[#allocation5 + $0x170] sm:$0xff] }
  0x49   :  { %v636_v11 = vpack.c.bf16 %v115_v9, %v113_v8  ;;  %v117_v14 = vld [vmem:[#allocation5 + $0x188] sm:$0xff]  ;;  %v119_v15 = vld [vmem:[#allocation5 + $0x198] sm:$0xff]  ;;  %v638_v16 = vpack.c.bf16 %v114_v13, %v112_v12  ;;  %v116_v18 = vld [vmem:[#allocation5 + $0x180] sm:$0xff] }
  0x4a   :  { %v640_v17 = vpack.c.bf16 %v119_v15, %v117_v14  ;;  %v118_v19 = vld [vmem:[#allocation5 + $0x190] sm:$0xff]  ;;  %v121_v20 = vld [vmem:[#allocation5 + $0x1a8] sm:$0xff]  ;;  %v123_v21 = vld [vmem:[#allocation5 + $0x1b8] sm:$0xff] }
  0x4b   :  { %611 = vmatpush1.bf16.msra.mxu0 %v610_v31  ;;  %663 = vmatpush3.bf16.msra.mxu1 %v660_v56  ;;  %v642_v22 = vpack.c.bf16 %v118_v19, %v116_v18  ;;  %v644_v23 = vpack.c.bf16 %v123_v21, %v121_v20  ;;  %v120_v24 = vld [vmem:[#allocation5 + $0x1a0] sm:$0xff]  ;;  %v122_v25 = vld [vmem:[#allocation5 + $0x1b0] sm:$0xff]  ;;  %v125_v26 = vld [vmem:[#allocation5 + $0x1c8] sm:$0xff] }
  0x4c   :  { %613 = vmatprep.subr.bf16.mxu0 %v612_v32  ;;  %v127_v27 = vld [vmem:[#allocation5 + $0x1d8] sm:$0xff]  ;;  %v646_v28 = vpack.c.bf16 %v122_v25, %v120_v24  ;;  %v124_v30 = vld [vmem:[#allocation5 + $0x1c0] sm:$0xff]  ;;  %v126_v31 = vld [vmem:[#allocation5 + $0x1d0] sm:$0xff] }
  0x4d   :  { %v648_v29 = vpack.c.bf16 %v127_v27, %v125_v26  ;;  %v129_v32 = vld [vmem:[#allocation5 + $0x1e8] sm:$0xff]  ;;  %v131_v33 = vld [vmem:[#allocation5 + $0x1f8] sm:$0xff]  ;;  %v650_v34 = vpack.c.bf16 %v126_v31, %v124_v30  ;;  %v128_v36 = vld [vmem:[#allocation5 + $0x1e0] sm:$0xff] }
  0x4e   :  { %v652_v35 = vpack.c.bf16 %v131_v33, %v129_v32  ;;  %v148_v39 = vld [vmem:[#allocation2] sm:$0xff]  ;;  %v151_v40 = vld [vmem:[#allocation2 + $0x18] sm:$0xff]  ;;  %v150_v41 = vld [vmem:[#allocation2 + $0x10] sm:$0xff] }
  0x4f   :  { %615 = vmatpush1.bf16.msra.mxu0 %v614_v37  ;;  %v130_v37 = vld [vmem:[#allocation5 + $0x1f0] sm:$0xff]  ;;  %v153_v42 = vld [vmem:[#allocation2 + $0x28] sm:$0xff]  ;;  %v152_v43 = vld [vmem:[#allocation2 + $0x20] sm:$0xff] }
  0x50   :  { %617 = vmatprep.subr.bf16.mxu0 %v616_v38  ;;  %v654_v38 = vpack.c.bf16 %v130_v37, %v128_v36  ;;  %v157_v46 = vld [vmem:[#allocation2 + $0x48] sm:$0xff]  ;;  %v156_v47 = vld [vmem:[#allocation2 + $0x40] sm:$0xff]  ;;  %v159_v48 = vld [vmem:[#allocation2 + $0x58] sm:$0xff] }
  0x51   :  { %v158_v49 = vld [vmem:[#allocation2 + $0x50] sm:$0xff]  ;;  %v161_v50 = vld [vmem:[#allocation2 + $0x68] sm:$0xff]  ;;  %v160_v51 = vld [vmem:[#allocation2 + $0x60] sm:$0xff] }
  0x52   :  { %v163_v52 = vld [vmem:[#allocation2 + $0x78] sm:$0xff]  ;;  %v162_v53 = vld [vmem:[#allocation2 + $0x70] sm:$0xff]  ;;  %v137_v55 = vld [vmem:[#allocation7 + $0x28] sm:$0xff] }
  0x53   :  { %619 = vmatpush1.bf16.msra.mxu0 %v618_v44  ;;  %v155_v44 = vld [vmem:[#allocation2 + $0x38] sm:$0xff]  ;;  %v140_v60 = vld [vmem:[#allocation7 + $0x40] sm:$0xff]  ;;  %v141_v61 = vld [vmem:[#allocation7 + $0x48] sm:$0xff] }
  0x54   :  { %621 = vmatprep.subr.bf16.mxu0 %v620_v45  ;;  %v154_v45 = vld [vmem:[#allocation2 + $0x30] sm:$0xff]  ;;  %v139_v58 = vld [vmem:[#allocation7 + $0x38] sm:$0xff]  ;;  %v144_v2 = vld [vmem:[#allocation7 + $0x60] sm:$0xff] }
  0x55   :  { %v143_v0 = vld [vmem:[#allocation7 + $0x58] sm:$0xff]  ;;  %v145_v3 = vld [vmem:[#allocation7 + $0x68] sm:$0xff] }
  0x56   :  { %v147_v6 = vld [vmem:[#allocation7 + $0x78] sm:$0xff] }
  0x57   :  { %623 = vmatpush1.bf16.msra.mxu0 %v622_v54  ;;  %v136_v54 = vld [vmem:[#allocation7 + $0x20] sm:$0xff] }
  0x58   :  { %625 = vmatprep.subr.bf16.mxu0 %v624_v57  ;;  %v664_v56 = vpack.c.bf16 %v137_v55, %v136_v54  ;;  %v138_v57 = vld [vmem:[#allocation7 + $0x30] sm:$0xff] }
  0x59   :  { %v668_v59 = vpack.c.bf16 %v139_v58, %v138_v57 }
  0x5a   :  { %665 = vmatprep.subr.bf16.mxu1 %v664_v56 }
  0x5b   :  { %627 = vmatpush1.bf16.msra.mxu0 %v626_v62  ;;  %667 = vmatpush3.bf16.msra.mxu1 %v664_v56  ;;  %v672_v62 = vpack.c.bf16 %v141_v61, %v140_v60 }
  0x5c   :  { %629 = vmatprep.subr.bf16.mxu0 %v628_v63  ;;  %669 = vmatprep.subr.bf16.mxu1 %v668_v59  ;;  %v142_v63 = vld [vmem:[#allocation7 + $0x50] sm:$0xff] }
  0x5d   :  { %v676_v1 = vpack.c.bf16 %v143_v0, %v142_v63 }
  0x5f   :  { %631 = vmatpush1.bf16.msra.mxu0 %v630_v4  ;;  %671 = vmatpush3.bf16.msra.mxu1 %v668_v59  ;;  %v680_v4 = vpack.c.bf16 %v145_v3, %v144_v2 }
  0x60   :  { %633 = vmatprep.subr.bf16.mxu0 %v632_v5  ;;  %673 = vmatprep.subr.bf16.mxu1 %v672_v62  ;;  %v146_v5 = vld [vmem:[#allocation7 + $0x70] sm:$0xff] }
  0x61   :  { %v684_v7 = vpack.c.bf16 %v147_v6, %v146_v5 }
  0x63   :  { %635 = vmatpush1.bf16.msra.mxu0 %v634_v10  ;;  %675 = vmatpush3.bf16.msra.mxu1 %v672_v62 }
  0x64   :  { %637 = vmatprep.subr.bf16.mxu0 %v636_v11  ;;  %677 = vmatprep.subr.bf16.mxu1 %v676_v1 }
  0x67   :  { %639 = vmatpush1.bf16.msra.mxu0 %v638_v16  ;;  %679 = vmatpush3.bf16.msra.mxu1 %v676_v1 }
  0x68   :  { %641 = vmatprep.subr.bf16.mxu0 %v640_v17  ;;  %681 = vmatprep.subr.bf16.mxu1 %v680_v4 }
  0x6b   :  { %643 = vmatpush1.bf16.msra.mxu0 %v642_v22  ;;  %683 = vmatpush3.bf16.msra.mxu1 %v680_v4 }
  0x6c   :  { %645 = vmatprep.subr.bf16.mxu0 %v644_v23  ;;  %685 = vmatprep.subr.bf16.mxu1 %v684_v7 }
  0x6f   :  { %647 = vmatpush1.bf16.msra.mxu0 %v646_v28  ;;  %687 = vmatpush3.bf16.msra.mxu1 %v684_v7 }
  0x70   :  { %649 = vmatprep.subr.bf16.mxu0 %v648_v29 }
  0x73   :  { %651 = vmatpush1.bf16.msra.mxu0 %v650_v34 }
  0x74   :  { %653 = vmatprep.subr.bf16.mxu0 %v652_v35 }
  0x77   :  { %655 = vmatpush1.bf16.msra.mxu0 %v654_v38 }
  0x7a   :  { %229 = vmatmul.mubr.f32.vlgmr.msra.gmra.mrb[0].mxu0 %v148_v39 }
  0x7b   :  { %234 = vmatprep.mubr.f32.mxu0 %v151_v40 }
  0x7e   :  { %235 = vmatmul.mubr.f32.gmra.mrb[2].mxu0 %v150_v41 }
  0x7f   :  { %240 = vmatprep.mubr.f32.mxu0 %v153_v42 }
  0x82   :  { %241 = vmatmul.mubr.f32.gmra.mrb[4].mxu0 %v152_v43 }
  0x83   :  { %246 = vmatprep.mubr.f32.mxu0 %v155_v44 }
  0x86   :  { %247 = vmatmul.mubr.f32.gmra.mrb[6].mxu0 %v154_v45 }
  0x87   :  { %252 = vmatprep.mubr.f32.mxu0 %v157_v46 }
  0x8a   :  { %253 = vmatmul.mubr.f32.gmra.mrb[8].mxu0 %v156_v47 }
  0x8b   :  { %258 = vmatprep.mubr.f32.mxu0 %v159_v48 }
  0x8e   :  { %259 = vmatmul.mubr.f32.gmra.mrb[10].mxu0 %v158_v49 }
  0x8f   :  { %264 = vmatprep.mubr.f32.mxu0 %v161_v50 }
  0x92   :  { %265 = vmatmul.mubr.f32.gmra.mrb[12].mxu0 %v160_v51 }
  0x93   :  { %270 = vmatprep.mubr.f32.mxu0 %v163_v52 }
  0x96   :  { %271 = vmatmul.mubr.f32.gmra.mrb[14].mxu0 %v162_v53 }
 0x14d   :  { %v230_v8 = vpop.f32.mrb[0].mxu0 }
 0x14e   :  { %v277_v9 = vmul.f32 %v230_v8, %v230_v8  ;;  %v232_v10 = vpop.f32.mrb[1].mxu0 }
 0x14f   :  { %v285_v11 = vmul.f32 %v232_v10, %v232_v10 }
 0x151   :  { %v293_v12 = vadd.f32 %v285_v11, %v277_v9  ;;  %v236_v13 = vpop.f32.mrb[2].mxu0 }
 0x152   :  { %v278_v14 = vmul.f32 %v236_v13, %v236_v13  ;;  %v238_v15 = vpop.f32.mrb[3].mxu0 }
 0x153   :  { %v301_v16 = vmax.f32 %v293_v12, 1e-07  ;;  %v286_v17 = vmul.f32 %v238_v15, %v238_v15 }
 0x155   :  { %v294_v18 = vadd.f32 %v286_v17, %v278_v14  ;;  %v242_v19 = vpop.f32.mrb[4].mxu0  ;;  %697 = vrsqrt.f32 %v301_v16  ;;  %vm311_vm0 = vcmp.eq.f32.partialorder %v301_v16, inf  ;;  %v314_v40 = vand.u32 2147483648, %v301_v16 }
 0x156   :  { %v279_v20 = vmul.f32 %v242_v19, %v242_v19  ;;  %v244_v21 = vpop.f32.mrb[5].mxu0  ;;  %vm313_vm1 = vcmp.eq.f32.partialorder %v301_v16, 0.0 }
 0x157   :  { %v302_v22 = vmax.f32 %v294_v18, 1e-07  ;;  %v287_v23 = vmul.f32 %v244_v21, %v244_v21 }
 0x159   :  { %v295_v24 = vadd.f32 %v287_v23, %v279_v20  ;;  %v248_v25 = vpop.f32.mrb[6].mxu0  ;;  %699 = vrsqrt.f32 %v302_v22  ;;  %vm318_vm2 = vcmp.eq.f32.partialorder %v302_v22, inf  ;;  %v321_v51 = vand.u32 2147483648, %v302_v22 }
 0x15a   :  { %v280_v26 = vmul.f32 %v248_v25, %v248_v25  ;;  %v250_v27 = vpop.f32.mrb[7].mxu0  ;;  %vm320_vm3 = vcmp.eq.f32.partialorder %v302_v22, 0.0 }
 0x15b   :  { %v303_v28 = vmax.f32 %v295_v24, 1e-07  ;;  %v288_v29 = vmul.f32 %v250_v27, %v250_v27 }
 0x15d   :  { %v296_v30 = vadd.f32 %v288_v29, %v280_v26  ;;  %v254_v31 = vpop.f32.mrb[8].mxu0  ;;  %701 = vrsqrt.f32 %v303_v28  ;;  %vm325_vm4 = vcmp.eq.f32.partialorder %v303_v28, inf  ;;  %v328_v62 = vand.u32 2147483648, %v303_v28 }
 0x15e   :  { %v281_v32 = vmul.f32 %v254_v31, %v254_v31  ;;  %v256_v33 = vpop.f32.mrb[9].mxu0  ;;  %vm327_vm5 = vcmp.eq.f32.partialorder %v303_v28, 0.0 }
 0x15f   :  { %v698_v34 = vpop.eup %697  ;;  %v304_v35 = vmax.f32 %v296_v30, 1e-07  ;;  %v289_v36 = vmul.f32 %v256_v33, %v256_v33 }
 0x160   :  { %v310_v37 = vmul.f32 %v698_v34, %v301_v16 }
 0x161   :  { %v297_v38 = vadd.f32 %v289_v36, %v281_v32  ;;  %v260_v39 = vpop.f32.mrb[10].mxu0  ;;  %703 = vrsqrt.f32 %v304_v35  ;;  %vm332_vm6 = vcmp.eq.f32.partialorder %v304_v35, inf  ;;  %v335_v8 = vand.u32 2147483648, %v304_v35 }
 0x162   :  { %v282_v41 = vmul.f32 %v260_v39, %v260_v39  ;;  %v262_v42 = vpop.f32.mrb[11].mxu0  ;;  %v312_v43 = vsel %vm311_vm0, %v301_v16, %v310_v37  ;;  %vm334_vm7 = vcmp.eq.f32.partialorder %v304_v35, 0.0 }
 0x163   :  { %v700_v44 = vpop.eup %699  ;;  %v305_v45 = vmax.f32 %v297_v38, 1e-07  ;;  %v290_v46 = vmul.f32 %v262_v42, %v262_v42  ;;  %v315_v47 = vsel %vm313_vm1, %v314_v40, %v312_v43 }
 0x164   :  { %580 = vmatprep.mubr.f32.mxu1 %v315_v47  ;;  %v317_v48 = vmul.f32 %v700_v44, %v302_v22 }
 0x165   :  { %v298_v49 = vadd.f32 %v290_v46, %v282_v41  ;;  %v266_v50 = vpop.f32.mrb[12].mxu0  ;;  %705 = vrsqrt.f32 %v305_v45  ;;  %vm339_vm8 = vcmp.eq.f32.partialorder %v305_v45, inf  ;;  %v342_v14 = vand.u32 2147483648, %v305_v45 }
 0x166   :  { %v283_v52 = vmul.f32 %v266_v50, %v266_v50  ;;  %v268_v53 = vpop.f32.mrb[13].mxu0  ;;  %v319_v54 = vsel %vm318_vm2, %v302_v22, %v317_v48  ;;  %vm341_vm9 = vcmp.eq.f32.partialorder %v305_v45, 0.0 }
 0x167   :  { %v702_v55 = vpop.eup %701  ;;  %v306_v56 = vmax.f32 %v298_v49, 1e-07  ;;  %v291_v57 = vmul.f32 %v268_v53, %v268_v53  ;;  %v322_v58 = vsel %vm320_vm3, %v321_v51, %v319_v54 }
 0x168   :  { %581 = vmatmul.mubr.f32.vlgmr.msra.gmra.mrb[0].mxu1 %v322_v58  ;;  %v324_v59 = vmul.f32 %v702_v55, %v303_v28 }
 0x169   :  { %v299_v60 = vadd.f32 %v291_v57, %v283_v52  ;;  %v272_v61 = vpop.f32.mrb[14].mxu0  ;;  %707 = vrsqrt.f32 %v306_v56  ;;  %vm346_vm10 = vcmp.eq.f32.partialorder %v306_v56, inf  ;;  %v349_v19 = vand.u32 2147483648, %v306_v56 }
 0x16a   :  { %v284_v63 = vmul.f32 %v272_v61, %v272_v61  ;;  %v274_v0 = vpop.f32.mrb[15].mxu0  ;;  %v326_v1 = vsel %vm325_vm4, %v303_v28, %v324_v59  ;;  %vm348_vm11 = vcmp.eq.f32.partialorder %v306_v56, 0.0 }
 0x16b   :  { %v704_v2 = vpop.eup %703  ;;  %v307_v3 = vmax.f32 %v299_v60, 1e-07  ;;  %v292_v4 = vmul.f32 %v274_v0, %v274_v0  ;;  %v329_v5 = vsel %vm327_vm5, %v328_v62, %v326_v1 }
 0x16c   :  { %583 = vmatprep.mubr.f32.mxu1 %v329_v5  ;;  %v331_v6 = vmul.f32 %v704_v2, %v304_v35 }
 0x16d   :  { %v300_v7 = vadd.f32 %v292_v4, %v284_v63  ;;  %709 = vrsqrt.f32 %v307_v3  ;;  %vm353_vm12 = vcmp.eq.f32.partialorder %v307_v3, inf  ;;  %v356_v24 = vand.u32 2147483648, %v307_v3 }
 0x16e   :  { %v333_v9 = vsel %vm332_vm6, %v304_v35, %v331_v6  ;;  %vm355_vm13 = vcmp.eq.f32.partialorder %v307_v3, 0.0 }
 0x16f   :  { %v706_v10 = vpop.eup %705  ;;  %v308_v11 = vmax.f32 %v300_v7, 1e-07  ;;  %v336_v12 = vsel %vm334_vm7, %v335_v8, %v333_v9 }
 0x170   :  { %584 = vmatmul.mubr.f32.gmra.mrb[2].mxu1 %v336_v12  ;;  %v338_v13 = vmul.f32 %v706_v10, %v305_v45 }
 0x171   :  { %711 = vrsqrt.f32 %v308_v11  ;;  %vm360_vm14 = vcmp.eq.f32.partialorder %v308_v11, inf  ;;  %v363_v29 = vand.u32 2147483648, %v308_v11  ;;  %vm362_vm15 = vcmp.eq.f32.partialorder %v308_v11, 0.0 }
 0x172   :  { %v340_v15 = vsel %vm339_vm8, %v305_v45, %v338_v13 }
 0x173   :  { %v708_v16 = vpop.eup %707  ;;  %v343_v17 = vsel %vm341_vm9, %v342_v14, %v340_v15 }
 0x174   :  { %586 = vmatprep.mubr.f32.mxu1 %v343_v17  ;;  %v345_v18 = vmul.f32 %v708_v16, %v306_v56 }
 0x176   :  { %v347_v20 = vsel %vm346_vm10, %v306_v56, %v345_v18 }
 0x177   :  { %v710_v21 = vpop.eup %709  ;;  %v350_v22 = vsel %vm348_vm11, %v349_v19, %v347_v20 }
 0x178   :  { %587 = vmatmul.mubr.f32.gmra.mrb[4].mxu1 %v350_v22  ;;  %v352_v23 = vmul.f32 %v710_v21, %v307_v3 }
 0x17a   :  { %v354_v25 = vsel %vm353_vm12, %v307_v3, %v352_v23 }
 0x17b   :  { %v712_v26 = vpop.eup %711  ;;  %v357_v27 = vsel %vm355_vm13, %v356_v24, %v354_v25 }
 0x17c   :  { %589 = vmatprep.mubr.f32.mxu1 %v357_v27  ;;  %v359_v28 = vmul.f32 %v712_v26, %v308_v11 }
 0x17e   :  { %v361_v30 = vsel %vm360_vm14, %v308_v11, %v359_v28 }
 0x17f   :  { %v364_v31 = vsel %vm362_vm15, %v363_v29, %v361_v30 }
 0x180   :  { %590 = vmatmul.mubr.f32.gmra.mrb[6].mxu1 %v364_v31 }
 0x23b   :  { %v582_v32 = vpop.f32.mrb[0].mxu1 }
 0x23c   :  { %v431_v33 = vpop.f32.mrb[1].mxu1  ;;  %v471_v36 = vmax.f32 %v582_v32, 1e-07 }
 0x23d   :  { %v470_v37 = vmax.f32 %v431_v33, 1e-07 }
 0x23e   :  { %713 = vlog2.f32 %v471_v36 }
 0x23f   :  { %715 = vlog2.f32 %v470_v37 }
 0x243   :  { %v585_v34 = vpop.f32.mrb[2].mxu1 }
 0x244   :  { %v441_v35 = vpop.f32.mrb[3].mxu1  ;;  %v473_v42 = vmax.f32 %v585_v34, 1e-07 }
 0x245   :  { %v472_v43 = vmax.f32 %v441_v35, 1e-07 }
 0x248   :  { %v714_v48 = vpop.eup %713 }
 0x249   :  { %v716_v49 = vpop.eup %715  ;;  %v481_v52 = vmul.f32 0.6931472, %v714_v48 }
 0x24a   :  { %v479_v54 = vmul.f32 0.6931472, %v716_v49 }
 0x24b   :  { %v588_v38 = vpop.f32.mrb[4].mxu1 }
 0x24c   :  { %v475_v39 = vmax.f32 %v588_v38, 1e-07  ;;  %v451_v40 = vpop.f32.mrb[5].mxu1 }
 0x24d   :  { %v474_v41 = vmax.f32 %v451_v40, 1e-07 }
 0x24e   :  { %717 = vlog2.f32 %v475_v39 }
 0x24f   :  { %719 = vlog2.f32 %v474_v41 }
 0x250   :  { %721 = vlog2.f32 %v473_v42 }
 0x251   :  { %723 = vlog2.f32 %v472_v43 }
 0x253   :  { %v591_v44 = vpop.f32.mrb[6].mxu1 }
 0x254   :  { %v477_v45 = vmax.f32 %v591_v44, 1e-07  ;;  %v461_v46 = vpop.f32.mrb[7].mxu1 }
 0x255   :  { %v476_v47 = vmax.f32 %v461_v46, 1e-07 }
 0x256   :  { %725 = vlog2.f32 %v477_v45 }
 0x257   :  { %727 = vlog2.f32 %v476_v47 }
 0x258   :  { %v718_v50 = vpop.eup %717 }
 0x259   :  { %v720_v51 = vpop.eup %719  ;;  %v489_v53 = vmul.f32 0.6931472, %v718_v50 }
 0x25a   :  { %v487_v55 = vmul.f32 0.6931472, %v720_v51  ;;  %v722_v59 = vpop.eup %721 }
 0x25b   :  { %v495_v56 = vsub.f32 %v481_v52, %v489_v53  ;;  %v724_v61 = vpop.eup %723  ;;  %v485_v1 = vmul.f32 0.6931472, %v722_v59 }
 0x25c   :  { %v494_v57 = vsub.f32 %v479_v54, %v487_v55  ;;  %v483_v3 = vmul.f32 0.6931472, %v724_v61 }
 0x25d   :  { %v499_v58 = vand.u32 2147483647, %v495_v56 }
 0x25e   :  { %v498_v60 = vand.u32 2147483647, %v494_v57 }
 0x260   :  { %v726_v62 = vpop.eup %725  ;;  %v502_v63 = vadd.f32 %v499_v58, %v498_v60 }
 0x261   :  { %v728_v0 = vpop.eup %727  ;;  %v493_v2 = vmul.f32 0.6931472, %v726_v62 }
 0x262   :  { %v491_v4 = vmul.f32 0.6931472, %v728_v0 }
 0x263   :  { %v497_v5 = vsub.f32 %v485_v1, %v493_v2 }
 0x264   :  { %v496_v6 = vsub.f32 %v483_v3, %v491_v4 }
 0x265   :  { %v501_v8 = vand.u32 2147483647, %v497_v5 }
 0x266   :  { %v500_v7 = vand.u32 2147483647, %v496_v6 }
 0x268   :  { %v503_v9 = vadd.f32 %v502_v63, %v500_v7 }
 0x26a   :  { %v504_v10 = vadd.f32 %v503_v9, %v501_v8 }
 0x26c   :  { %507 = vst [vmem:[#allocation8] sm:$0xff] %v504_v10 }
 0x26d   :  { %806 = shalt.err (!%p803_p0)
}
 0x26e   :  { %s807_s27 = scalar_lea.hbm %s909_s3, 128 }
 0x26f   :  { %p808_p1 = scmp.ne.s32.totalorder %s909_s3, %s807_s27  ;;  %p811_p2 = scmp.lt.u32.totalorder %s807_s27, %s909_s3 }
 0x271   :  { %p813_p3 = pnand %p811_p2, %p808_p1 }
 0x273   :  { %816 = shalt.err (!%p813_p3)
}
 0x274   :  { %517 = dma.vmem_to_hbm [thread:$0]  %s515_s23, 128, %s909_s3, [#allocation4]  }
 0x275   :  { %821 = dma.done.wait [#allocation4], 128  }
 0x276   :  { %822 = vsyncadd [#allocation4], 4294967168 }
 0x277   :  { %521 = vsyncpa [#allocation3], 1 }
 0x278   :  { %522 = vsyncpa [#allocation6], 1 }
 0x279   :  { %523 = vsyncpa [#allocation4], 1 }

</bundles_post_ra>
